<compile_context>
chip_gen: v6e
topology: v6e:2x2x1
jax: 0.10.0
libtpu: 0.0.40
codegen_flags: <defaults>
</compile_context>

<pallas_src>
import functools

import numpy as np
import jax
import jax.numpy as jnp
from jax.experimental import pallas as pl
from jax.experimental.pallas import tpu as pltpu

BN_EPS = 1e-5


# ----------------------------- fused Pallas kernel -----------------------------

def dilated_fused_kernel(x_ref, wp1_ref, wmid_ref, wc2_ref, bias_ref, o_ref, *, dilate):
    """Entire Dilated.forward for a tile of B images, fully fused in VMEM.

    x_ref    : (B, H, W*C)     input images (bf16), lane = w*C + c
    wp1_ref  : (3*W*C, W*C)    banded 3x3 weights, p1_conv  (BN scale folded, bf16)
    wmid_ref : (4*W*C, W*C)    [banded dilated 3x3 p2_conv ; block-diag 1x1 conv1]
    wc2_ref  : (3*W*C, W*C)    banded 3x3 weights, conv2    (BN scale folded, bf16)
    bias_ref : (3, W*C)        rows = [p1 shift, p2_bn+bn1 shift, conv2 shift] (f32)
    o_ref    : (B, H, W*C)     output (f32)
    """
    B, H, WC = x_ref.shape
    x = x_ref[...]                                            # (B, H, WC) bf16

    def taps(v, d):
        # Per-image H-axis halo via zero-padded row shifts (copies, no matmul),
        # then lane-concat the three kernel-row taps.  (pad == d for 3x3 conv.)
        z = jnp.zeros((B, d, WC), v.dtype)
        top = jnp.concatenate([z, v[:, :H - d, :]], axis=1)   # out row i sees v[i - d]
        bot = jnp.concatenate([v[:, d:, :], z], axis=1)       # out row i sees v[i + d]
        return jnp.concatenate([top, v, bot], axis=-1)        # (B, H, 3*WC)

    def mm(a, w_ref):
        # One MXU dot over all B images at once: M = B*H rows.
        w = w_ref[...]
        return jnp.dot(a.reshape(B * H, a.shape[-1]).astype(w.dtype), w,
                       preferred_element_type=jnp.float32)    # (B*H, WC) f32

    b_p1 = bias_ref[0:1, :]
    b_mid = bias_ref[1:2, :]
    b_c2 = bias_ref[2:3, :]

    # p1_conv: 3x3 conv + BN + ReLU
    conv = jnp.maximum(mm(taps(x, 1), wp1_ref) + b_p1, 0.0)
    conv = conv.astype(jnp.bfloat16).reshape(B, H, WC)

    # relu1 = ReLU( p2_bn(p2_conv(conv)) + bn1(conv1(x)) )  -- ONE K = 4*WC matmul
    merged = jnp.concatenate([taps(conv, dilate), x], axis=-1)      # (B, H, 4*WC)
    relu1 = jnp.maximum(mm(merged, wmid_ref) + b_mid, 0.0)
    relu1 = relu1.astype(jnp.bfloat16).reshape(B, H, WC)

    # conv2: 3x3 conv + BN + ReLU
    out = jnp.maximum(mm(taps(relu1, 1), wc2_ref) + b_c2, 0.0)
    o_ref[...] = out.reshape(B, H, WC).astype(o_ref.dtype)


# ----------------------------- pallas_call wrappers -----------------------------

def _pick_batch_tile(n, max_tile=8):
    """Largest divisor of n <= max_tile that keeps >= 2 grid steps when n >= 2,
    so both TensorCores get work on v7x megacore."""
    cap = min(max_tile, max(1, n // 2))
    for t in range(cap, 0, -1):
        if n % t == 0:
            return t
    return 1


def dilated_forward_nhwc(x_flat, params, *, dilate=3, max_batch_tile=8):
    """Zero-transpose fast path.  x_flat: (N, H, W*C) with lane = w*C + c."""
    N, H, WC = x_flat.shape
    B = _pick_batch_tile(N, max_batch_tile)

    return pl.pallas_call(
        functools.partial(dilated_fused_kernel, dilate=dilate),
        out_shape=jax.ShapeDtypeStruct((N, H, WC), jnp.float32),
        grid=(N // B,),
        in_specs=[
            pl.BlockSpec((B, H, WC), lambda n: (n, 0, 0)),
            # Constant-index weight/bias blocks: DMA'd once, stay resident in VMEM.
            pl.BlockSpec(params['w_p1'].shape, lambda n: (0, 0)),
            pl.BlockSpec(params['w_mid'].shape, lambda n: (0, 0)),
            pl.BlockSpec(params['w_c2'].shape, lambda n: (0, 0)),
            pl.BlockSpec(params['bias'].shape, lambda n: (0, 0)),
        ],
        out_specs=pl.BlockSpec((B, H, WC), lambda n: (n, 0, 0)),
        compiler_params=pltpu.CompilerParams(
            dimension_semantics=("parallel",)),   # batch tiles across TCs (v7x)
    )(x_flat.astype(jnp.bfloat16), params['w_p1'], params['w_mid'],
      params['w_c2'], params['bias'])


def dilated_forward(x_nchw, params, *, dilate=3):
    # PyTorch-layout adapter.  These two transposes are the only NCHW<->NHWC traffic;
    # an NHWC end-to-end pipeline should call dilated_forward_nhwc directly.
    N, C, H, W = x_nchw.shape
    x_flat = jnp.transpose(x_nchw, (0, 2, 3, 1)).reshape(N, H, W * C)
    out_flat = dilated_forward_nhwc(x_flat, params, dilate=dilate)
    return jnp.transpose(out_flat.reshape(N, H, W, C), (0, 3, 1, 2))   # back to NCHW


# ----------------------------- parameter packing (host-side glue) -----------------------------

def _fold_bn(gamma, beta, mean, var, eps=BN_EPS):
    gamma, beta, mean, var = (np.asarray(a, np.float32) for a in (gamma, beta, mean, var))
    scale = gamma / np.sqrt(var + eps)
    shift = beta - mean * scale
    return scale.astype(np.float32), shift.astype(np.float32)


def _banded_conv_weight(w_oihw, W, dilation=1):
    """Pack OIHW kxk conv weights into a stacked banded matrix.

    Column (W-axis) zero-padding is baked in (out-of-range taps dropped), so the
    kernel multiplies an UNPADDED-width activation.  Returned shape
    (KH*W*Cin, W*Cout) matches the lane-concat over kernel rows (taps order r=0,1,2).
    """
    w = np.asarray(w_oihw, np.float32)
    Cout, Cin, KH, KW = w.shape
    pad = dilation * (KW - 1) // 2
    wk = np.zeros((KH, W * Cin, W * Cout), np.float32)
    for r in range(KH):
        for s in range(KW):
            wt = w[:, :, r, s].T                           # (Cin, Cout)
            for j in range(W):                             # output column
                jin = j + s * dilation - pad
                if 0 <= jin < W:
                    wk[r, jin * Cin:(jin + 1) * Cin,
                       j * Cout:(j + 1) * Cout] = wt
    return wk.reshape(KH * W * Cin, W * Cout)


def pack_params(raw, W, dilate):
    """Banded conv matrices with BN folded, stacked [w_p2 ; w_c1], fused bias block."""
    s1, sh1 = _fold_bn(*raw['p1_bn'])
    s2, sh2 = _fold_bn(*raw['p2_bn'])
    sr, shr = _fold_bn(*raw['bn1'])
    s3, sh3 = _fold_bn(*raw['c2_bn'])

    def scaled_banded(w, dilation, scale):
        return _banded_conv_weight(w, W, dilation) * np.tile(scale, W)[None, :]

    w_p1 = scaled_banded(raw['p1_w'], 1, s1)               # (3*W*C, W*C)
    w_p2 = scaled_banded(raw['p2_w'], dilate, s2)          # (3*W*C, W*C)
    w_c2 = scaled_banded(raw['c2_w'], 1, s3)               # (3*W*C, W*C)

    # conv1 (1x1) + bn1 folded into a block-diagonal (W*C, W*C) matrix and stacked
    # under w_p2 so the residual rides the same K = 4*W*C matmul.
    a = np.asarray(raw['c1_w'], np.float32)[:, :, 0, 0].T * sr[None, :]   # (Cin, Cout)
    w_c1 = np.kron(np.eye(W, dtype=np.float32), a)
    w_mid = np.concatenate([w_p2, w_c1], axis=0)           # (4*W*C, W*C)

    bias = np.stack([np.tile(sh1, W),
                     np.tile(sh2, W) + np.tile(shr, W),
                     np.tile(sh3, W)], axis=0).astype(np.float32)          # (3, W*C)

    return {
        'w_p1': jnp.asarray(w_p1, jnp.bfloat16),
        'w_mid': jnp.asarray(w_mid, jnp.bfloat16),
        'w_c2': jnp.asarray(w_c2, jnp.bfloat16),
        'bias': jnp.asarray(bias, jnp.float32),
    }


def init_raw_params(key, dim):
    ks = jax.random.split(key, 8)
    std = 0.1

    def bn_params(k):
        kg, kb, km, kv = jax.random.split(k, 4)
        gamma = 1.0 + 0.05 * jax.random.normal(kg, (dim,), jnp.float32)
        beta = 0.05 * jax.random.normal(kb, (dim,), jnp.float32)
        mean = 0.05 * jax.random.normal(km, (dim,), jnp.float32)
        var = 0.9 + 0.2 * jax.random.uniform(kv, (dim,), jnp.float32)
        return (gamma, beta, mean, var)

    return {
        'p1_w': std * jax.random.normal(ks[0], (dim, dim, 3, 3), jnp.float32),
        'p2_w': std * jax.random.normal(ks[1], (dim, dim, 3, 3), jnp.float32),
        'c1_w': std * jax.random.normal(ks[2], (dim, dim, 1, 1), jnp.float32),
        'c2_w': std * jax.random.normal(ks[3], (dim, dim, 3, 3), jnp.float32),
        'p1_bn': bn_params(ks[4]),
        'p2_bn': bn_params(ks[5]),
        'bn1': bn_params(ks[6]),
        'c2_bn': bn_params(ks[7]),
    }


# ----------------------------- pure-JAX reference (correctness check) -----------------------------

def reference_forward(x_nchw, raw, dilate=3):
    def conv(v, w, dil=1):
        k = w.shape[2]
        p = dil * (k - 1) // 2
        return jax.lax.conv_general_dilated(
            v, w, window_strides=(1, 1), padding=[(p, p), (p, p)],
            rhs_dilation=(dil, dil),
            dimension_numbers=('NCHW', 'OIHW', 'NCHW'),
            precision=jax.lax.Precision.HIGHEST)

    def bn(v, bn_p):
        gamma, beta, mean, var = bn_p
        s = gamma / jnp.sqrt(var + BN_EPS)
        return v * s.reshape(1, -1, 1, 1) + (beta - mean * s).reshape(1, -1, 1, 1)

    c = jax.nn.relu(bn(conv(x_nchw, raw['p1_w']), raw['p1_bn']))       # p1_conv
    p2 = bn(conv(c, raw['p2_w'], dil=dilate), raw['p2_bn'])            # p2_conv + p2_bn
    b1 = bn(conv(x_nchw, raw['c1_w']), raw['bn1'])                     # conv1 + bn1
    r1 = jax.nn.relu(p2 + b1)                                          # relu1
    return jax.nn.relu(bn(conv(r1, raw['c2_w']), raw['c2_bn']))        # conv2


# ----------------------------- demo -----------------------------

if __name__ == "__main__":
    N, dim, H, W, dilate = 8, 8, 16, 16, 3          # W*C = 128 -> lane-dense
    key = jax.random.PRNGKey(0)
    kx, kw = jax.random.split(key)
    x = jax.random.normal(kx, (N, dim, H, W), jnp.float32)    # NCHW like PyTorch
    raw = init_raw_params(kw, dim)
    params = pack_params(raw, W, dilate)

    fwd = jax.jit(functools.partial(dilated_forward, dilate=dilate))
    out = fwd(x, params)
    jax.block_until_ready(out)

    assert out.shape == (N, dim, H, W)
    assert bool(jnp.all(jnp.isfinite(out)))

    ref = reference_forward(x, raw, dilate)
    err = float(jnp.max(jnp.abs(out - ref)))
    assert err < 5e-2, f"max abs error vs reference = {err}"   # bf16-MXU tolerance
    print("KERNEL_OK")
</pallas_src>

<mosaic_0001>
module attributes {stable_mosaic.version = 11 : i64} {
  func.func @dilated_fused_kernel(%arg0: i32, %arg1: memref<4x16x128xbf16, #tpu.memory_space<vmem>>, %arg2: memref<384x128xbf16, #tpu.memory_space<vmem>>, %arg3: memref<512x128xbf16, #tpu.memory_space<vmem>>, %arg4: memref<384x128xbf16, #tpu.memory_space<vmem>>, %arg5: memref<3x128xf32, #tpu.memory_space<vmem>>, %arg6: memref<4x16x128xf32, #tpu.memory_space<vmem>>) attributes {dimension_semantics = [#tpu.dimension_semantics<parallel>], iteration_bounds = array<i64: 2>, scalar_prefetch = 0 : i64, scratch_operands = 0 : i64, tpu.core_type = #tpu.core_type<tc>, window_params = [{transform_indices = @transform_0, window_bounds = array<i64: 4, 16, 128>}, {pipeline_mode = #tpu.pipeline_mode<synchronous>, transform_indices = @transform_1, window_bounds = array<i64: 384, 128>}, {pipeline_mode = #tpu.pipeline_mode<synchronous>, transform_indices = @transform_2, window_bounds = array<i64: 512, 128>}, {pipeline_mode = #tpu.pipeline_mode<synchronous>, transform_indices = @transform_3, window_bounds = array<i64: 384, 128>}, {pipeline_mode = #tpu.pipeline_mode<synchronous>, transform_indices = @transform_4, window_bounds = array<i64: 3, 128>}, {transform_indices = @transform_5, window_bounds = array<i64: 4, 16, 128>}]} {
    %c0 = arith.constant 0 : index
    %c0_0 = arith.constant 0 : index
    %c0_1 = arith.constant 0 : index
    %0 = vector.load %arg1[%c0, %c0_0, %c0_1] : memref<4x16x128xbf16, #tpu.memory_space<vmem>>, vector<4x16x128xbf16>
    %c0_2 = arith.constant 0 : index
    %c0_3 = arith.constant 0 : index
    %1 = vector.load %arg5[%c0_2, %c0_3] : memref<3x128xf32, #tpu.memory_space<vmem>>, vector<1x128xf32>
    %c1 = arith.constant 1 : index
    %c0_4 = arith.constant 0 : index
    %2 = vector.load %arg5[%c1, %c0_4] : memref<3x128xf32, #tpu.memory_space<vmem>>, vector<1x128xf32>
    %c2 = arith.constant 2 : index
    %c0_5 = arith.constant 0 : index
    %3 = vector.load %arg5[%c2, %c0_5] : memref<3x128xf32, #tpu.memory_space<vmem>>, vector<1x128xf32>
    %cst = arith.constant 0.000000e+00 : bf16
    %4 = vector.broadcast %cst : bf16 to vector<4x1x128xbf16>
    %5 = vector.extract_strided_slice %0 {offsets = [0, 0, 0], sizes = [4, 15, 128], strides = [1, 1, 1]} : vector<4x16x128xbf16> to vector<4x15x128xbf16>
    %6 = tpu.concatenate %4, %5 in 1 : vector<4x1x128xbf16>, vector<4x15x128xbf16> -> vector<4x16x128xbf16>
    %7 = vector.extract_strided_slice %0 {offsets = [0, 1, 0], sizes = [4, 15, 128], strides = [1, 1, 1]} : vector<4x16x128xbf16> to vector<4x15x128xbf16>
    %8 = tpu.concatenate %7, %4 in 1 : vector<4x15x128xbf16>, vector<4x1x128xbf16> -> vector<4x16x128xbf16>
    %9 = tpu.concatenate %6, %0, %8 in 2 : vector<4x16x128xbf16>, vector<4x16x128xbf16>, vector<4x16x128xbf16> -> vector<4x16x384xbf16>
    %c0_6 = arith.constant 0 : index
    %c0_7 = arith.constant 0 : index
    %10 = vector.load %arg2[%c0_6, %c0_7] : memref<384x128xbf16, #tpu.memory_space<vmem>>, vector<384x128xbf16>
    %11 = vector.shape_cast %9 : vector<4x16x384xbf16> to vector<64x384xbf16>
    %cst_8 = arith.constant dense<0.000000e+00> : vector<64x128xf32>
    %12 = tpu.matmul %11, %10, %cst_8 {dimension_numbers = #tpu.dot_dimension_numbers<[1], [0], [0], [1], [0, 0, 1, 1], [], []>} : vector<64x384xbf16>, vector<384x128xbf16>, vector<64x128xf32> -> vector<64x128xf32>
    %13 = vector.broadcast %1 : vector<1x128xf32> to vector<64x128xf32>
    %14 = arith.addf %12, %13 : vector<64x128xf32>
    %cst_9 = arith.constant 0.000000e+00 : f32
    %15 = vector.broadcast %cst_9 : f32 to vector<64x128xf32>
    %16 = arith.maximumf %14, %15 : vector<64x128xf32>
    %17 = arith.truncf %16 : vector<64x128xf32> to vector<64x128xbf16>
    %18 = vector.shape_cast %17 : vector<64x128xbf16> to vector<4x16x128xbf16>
    %cst_10 = arith.constant 0.000000e+00 : bf16
    %19 = vector.broadcast %cst_10 : bf16 to vector<4x3x128xbf16>
    %20 = vector.extract_strided_slice %18 {offsets = [0, 0, 0], sizes = [4, 13, 128], strides = [1, 1, 1]} : vector<4x16x128xbf16> to vector<4x13x128xbf16>
    %21 = tpu.concatenate %19, %20 in 1 : vector<4x3x128xbf16>, vector<4x13x128xbf16> -> vector<4x16x128xbf16>
    %22 = vector.extract_strided_slice %18 {offsets = [0, 3, 0], sizes = [4, 13, 128], strides = [1, 1, 1]} : vector<4x16x128xbf16> to vector<4x13x128xbf16>
    %23 = tpu.concatenate %22, %19 in 1 : vector<4x13x128xbf16>, vector<4x3x128xbf16> -> vector<4x16x128xbf16>
    %24 = tpu.concatenate %21, %18, %23 in 2 : vector<4x16x128xbf16>, vector<4x16x128xbf16>, vector<4x16x128xbf16> -> vector<4x16x384xbf16>
    %25 = tpu.concatenate %24, %0 in 2 : vector<4x16x384xbf16>, vector<4x16x128xbf16> -> vector<4x16x512xbf16>
    %c0_11 = arith.constant 0 : index
    %c0_12 = arith.constant 0 : index
    %26 = vector.load %arg3[%c0_11, %c0_12] : memref<512x128xbf16, #tpu.memory_space<vmem>>, vector<512x128xbf16>
    %27 = vector.shape_cast %25 : vector<4x16x512xbf16> to vector<64x512xbf16>
    %cst_13 = arith.constant dense<0.000000e+00> : vector<64x128xf32>
    %28 = tpu.matmul %27, %26, %cst_13 {dimension_numbers = #tpu.dot_dimension_numbers<[1], [0], [0], [1], [0, 0, 1, 1], [], []>} : vector<64x512xbf16>, vector<512x128xbf16>, vector<64x128xf32> -> vector<64x128xf32>
    %29 = vector.broadcast %2 : vector<1x128xf32> to vector<64x128xf32>
    %30 = arith.addf %28, %29 : vector<64x128xf32>
    %cst_14 = arith.constant 0.000000e+00 : f32
    %31 = vector.broadcast %cst_14 : f32 to vector<64x128xf32>
    %32 = arith.maximumf %30, %31 : vector<64x128xf32>
    %33 = arith.truncf %32 : vector<64x128xf32> to vector<64x128xbf16>
    %34 = vector.shape_cast %33 : vector<64x128xbf16> to vector<4x16x128xbf16>
    %cst_15 = arith.constant 0.000000e+00 : bf16
    %35 = vector.broadcast %cst_15 : bf16 to vector<4x1x128xbf16>
    %36 = vector.extract_strided_slice %34 {offsets = [0, 0, 0], sizes = [4, 15, 128], strides = [1, 1, 1]} : vector<4x16x128xbf16> to vector<4x15x128xbf16>
    %37 = tpu.concatenate %35, %36 in 1 : vector<4x1x128xbf16>, vector<4x15x128xbf16> -> vector<4x16x128xbf16>
    %38 = vector.extract_strided_slice %34 {offsets = [0, 1, 0], sizes = [4, 15, 128], strides = [1, 1, 1]} : vector<4x16x128xbf16> to vector<4x15x128xbf16>
    %39 = tpu.concatenate %38, %35 in 1 : vector<4x15x128xbf16>, vector<4x1x128xbf16> -> vector<4x16x128xbf16>
    %40 = tpu.concatenate %37, %34, %39 in 2 : vector<4x16x128xbf16>, vector<4x16x128xbf16>, vector<4x16x128xbf16> -> vector<4x16x384xbf16>
    %c0_16 = arith.constant 0 : index
    %c0_17 = arith.constant 0 : index
    %41 = vector.load %arg4[%c0_16, %c0_17] : memref<384x128xbf16, #tpu.memory_space<vmem>>, vector<384x128xbf16>
    %42 = vector.shape_cast %40 : vector<4x16x384xbf16> to vector<64x384xbf16>
    %cst_18 = arith.constant dense<0.000000e+00> : vector<64x128xf32>
    %43 = tpu.matmul %42, %41, %cst_18 {dimension_numbers = #tpu.dot_dimension_numbers<[1], [0], [0], [1], [0, 0, 1, 1], [], []>} : vector<64x384xbf16>, vector<384x128xbf16>, vector<64x128xf32> -> vector<64x128xf32>
    %44 = vector.broadcast %3 : vector<1x128xf32> to vector<64x128xf32>
    %45 = arith.addf %43, %44 : vector<64x128xf32>
    %cst_19 = arith.constant 0.000000e+00 : f32
    %46 = vector.broadcast %cst_19 : f32 to vector<64x128xf32>
    %47 = arith.maximumf %45, %46 : vector<64x128xf32>
    %48 = vector.shape_cast %47 : vector<64x128xf32> to vector<4x16x128xf32>
    %c0_20 = arith.constant 0 : index
    %c0_21 = arith.constant 0 : index
    %c0_22 = arith.constant 0 : index
    %49 = vector.load %arg6[%c0_20, %c0_21, %c0_22] : memref<4x16x128xf32, #tpu.memory_space<vmem>>, vector<4x16x128xf32>
    tpu.vector_store %arg6[%c0_20, %c0_21, %c0_22], %48 {strides = array<i32>} : memref<4x16x128xf32, #tpu.memory_space<vmem>>, vector<4x16x128xf32>,
    return
  }
  func.func @transform_0(%arg0: i32) -> (i32, i32, i32) {
    %c0_i32 = arith.constant 0 : i32
    %c0_i32_0 = arith.constant 0 : i32
    %c0_i32_1 = arith.constant 0 : i32
    return %arg0, %c0_i32, %c0_i32_0 : i32, i32, i32
  }
  func.func @transform_1(%arg0: i32) -> (i32, i32) {
    %c0_i32 = arith.constant 0 : i32
    %c0_i32_0 = arith.constant 0 : i32
    %c0_i32_1 = arith.constant 0 : i32
    return %c0_i32, %c0_i32_0 : i32, i32
  }
  func.func @transform_2(%arg0: i32) -> (i32, i32) {
    %c0_i32 = arith.constant 0 : i32
    %c0_i32_0 = arith.constant 0 : i32
    %c0_i32_1 = arith.constant 0 : i32
    return %c0_i32, %c0_i32_0 : i32, i32
  }
  func.func @transform_3(%arg0: i32) -> (i32, i32) {
    %c0_i32 = arith.constant 0 : i32
    %c0_i32_0 = arith.constant 0 : i32
    %c0_i32_1 = arith.constant 0 : i32
    return %c0_i32, %c0_i32_0 : i32, i32
  }
  func.func @transform_4(%arg0: i32) -> (i32, i32) {
    %c0_i32 = arith.constant 0 : i32
    %c0_i32_0 = arith.constant 0 : i32
    %c0_i32_1 = arith.constant 0 : i32
    return %c0_i32, %c0_i32_0 : i32, i32
  }
  func.func @transform_5(%arg0: i32) -> (i32, i32, i32) {
    %c0_i32 = arith.constant 0 : i32
    %c0_i32_0 = arith.constant 0 : i32
    %c0_i32_1 = arith.constant 0 : i32
    return %arg0, %c0_i32, %c0_i32_0 : i32, i32, i32
  }
}

</mosaic_0001>

<bundles_post_ra>
// kernel: dilated_forward.1
= control target key start
LH: loop header
LB: loop body
LE: loop exit
PB: predicated region body
PF: predicated region fallthrough
CT: control target
= control target key end

     0   :  { %s2049_s18 = smov 0   ;;  %s2443_s0 = inlined_call_operand.vmem [shape: bf16[8,16,128], index: 0, kind: input, shape index: {}]   ;;  %s2444_s1 = inlined_call_operand.vmem [shape: bf16[384,128], index: 1, kind: input, shape index: {}]   ;;  %s2445_s2 = inlined_call_operand.vmem [shape: bf16[512,128], index: 2, kind: input, shape index: {}]   ;;  %s2446_s3 = inlined_call_operand.vmem [shape: bf16[384,128], index: 3, kind: input, shape index: {}]   ;;  %s2447_s4 = inlined_call_operand.vmem [shape: f32[3,128], index: 4, kind: input, shape index: {}]   ;;  %s2448_s5 = inlined_call_operand.vmem [shape: f32[8,16,128], index: 5, kind: output, shape index: {}]  }
   0x1 LB: > { %s1585_s19 = sadd.s32 4294967295, %s2017_s18   ;;  %p1589_p0 = scmp.ge.s32.totalorder %s2017_s18, 1  ;;  %s2017_s18 = sphi %s2049_s18, %s15_s18  }
   0x2   : > { %p189_p1 = scmp.lt.s32.totalorder %s2017_s18, 3 }
   0x4   : > { %p190_p2 = pnand %p1589_p0, %p189_p1 }
   0x5   : > { %s1590_s11 = sshll.u32 (!%p190_p2), %s1585_s19, 2 }
   0x6   : > { %193 = sbr.rel (%p190_p2) target bundleno = 710 (0x2c6), region = 40  ;;  %p220_p3 = scmp.lt.s32.totalorder (!%p190_p2), %s1590_s11, 7 }
   0xb   : > { %v1927_v0 = vld [vmem:[%s2444_s1 + $0x78] sm:$0xff]   ;;  %v1930_v3 = vld [vmem:[%s2444_s1 + $0x70] sm:$0xff]   ;;  %v1933_v6 = vld [vmem:[%s2444_s1 + $0x68] sm:$0xff]   ;;  %s2458_s11 = smov (!%p220_p3, %s1590_s11), 7  ;;  %vm316_vm0 = vcmask 1047552   ;;  %vm297_vm1 = vcmask 1040384  }
   0xc   : > { %v1928_v1 = vld [vmem:[%s2444_s1 + $0xb8] sm:$0xff]   ;;  %1687 = vmatprep.subr.bf16.mxu0 %v1927_v0  ;;  %v1931_v4 = vld [vmem:[%s2444_s1 + $0xb0] sm:$0xff]   ;;  %v1934_v7 = vld [vmem:[%s2444_s1 + $0xa8] sm:$0xff]   ;;  %s1685_s6 = sshll.u32 %s2458_s11, 3  ;;  %vm317_vm2 = vsmask.f32 7424 }
   0xd   : > { %v1929_v2 = vld [vmem:[%s2444_s1 + $0x38] sm:$0xff]   ;;  %1871 = vmatprep.subr.bf16.mxu1 %v1928_v1  ;;  %v1932_v5 = vld [vmem:[%s2444_s1 + $0x30] sm:$0xff]   ;;  %v1935_v8 = vld [vmem:[%s2444_s1 + $0x28] sm:$0xff]   ;;  %s224_s16 = scalar_lea.vmem %s2443_s0, %s1685_s6  ;;  %vm298_vm3 = vsmask.f32 256  ;;  %vm701_vm6 = vcmask 1041408  }
   0xe   : > { %1688 = vmatpush3.bf16.msra.mxu0 %v1929_v2  ;;  %1872 = vmatpush3.bf16.msra.mxu1 %v1928_v1  ;;  %v1936_v9 = vld [vmem:[%s2444_s1 + $0x60] sm:$0xff]   ;;  %v1939_v12 = vld [vmem:[%s2444_s1 + $0x58] sm:$0xff]   ;;  %v1942_v15 = vld [vmem:[%s2444_s1 + $0x50] sm:$0xff]   ;;  %vm702_vm7 = vsmask.f32 1280  ;;  %vm724_vm8 = vcmask 1046528  }
   0xf   : > { %1689 = vmatprep.subr.bf16.mxu0 %v1930_v3  ;;  %1873 = vmatprep.subr.bf16.mxu1 %v1931_v4  ;;  %v1937_v10 = vld [vmem:[%s2444_s1 + $0xa0] sm:$0xff]   ;;  %v1940_v13 = vld [vmem:[%s2444_s1 + $0x98] sm:$0xff]   ;;  %v1943_v16 = vld [vmem:[%s2444_s1 + $0x90] sm:$0xff]   ;;  %vm725_vm9 = vsmask.f32 6400  ;;  %s1686_s29 = sshll.u32 %s2458_s11, 4 }
  0x10   : > { %v1938_v11 = vld [vmem:[%s2444_s1 + $0x20] sm:$0xff]   ;;  %v1941_v14 = vld [vmem:[%s2444_s1 + $0x18] sm:$0xff]   ;;  %v1944_v17 = vld [vmem:[%s2444_s1 + $0x10] sm:$0xff]   ;;  %s2430_s7 = scalar_lea.vmem %s2448_s5, %s1686_s29 }
  0x11   : > { %v1945_v18 = vld [vmem:[%s2444_s1 + $0x48] sm:$0xff]   ;;  %v1948_v21 = vld [vmem:[%s2444_s1 + $0x40] sm:$0xff]   ;;  %vm2142_vm4 = vmand %vm316_vm0, %vm317_vm2 }
  0x12   : > { %1690 = vmatpush3.bf16.msra.mxu0 %v1932_v5  ;;  %1874 = vmatpush3.bf16.msra.mxu1 %v1931_v4  ;;  %v1946_v19 = vld [vmem:[%s2444_s1 + $0x88] sm:$0xff]   ;;  %v1949_v22 = vld [vmem:[%s2444_s1 + $0x80] sm:$0xff]   ;;  %vm2147_vm5 = vmand %vm297_vm1, %vm298_vm3 }
  0x13   : > { %1691 = vmatprep.subr.bf16.mxu0 %v1933_v6  ;;  %1875 = vmatprep.subr.bf16.mxu1 %v1934_v7  ;;  %v1947_v20 = vld [vmem:[%s2444_s1 + $0x8] sm:$0xff]   ;;  %v2132_v23 = vld [vmem:[%s224_s16] sm:$0xff]   ;;  %v2153_v34 = vld [vmem:[%s224_s16 + $0x10] sm:$0xff]  }
  0x14   : > { %v1950_v24 = vld [vmem:[%s2444_s1] sm:$0xff]   ;;  %555 = vmatprep.mubr.bf16.mxu0 %v2132_v23  ;;  %v266_v25 = vshrl.u32 %v2132_v23, 16  ;;  %v269_v26 = vshll.u32 %v2132_v23, 16  ;;  %v2140_v27 = vld [vmem:[%s224_s16 + $0x8] sm:$0xff]   ;;  %v2155_v35 = vld [vmem:[%s224_s16 + $0x18] sm:$0xff]   ;;  %v280_v42 = vshrl.u32 %v2153_v34, 16 }
  0x15   : > { %v273_v32 = vshrl.u32 %v2140_v27, 16  ;;  %v276_v33 = vshll.u32 %v2140_v27, 16  ;;  %v1955_v40 = vld [vmem:[%s2445_s2 + $0x78] sm:$0xff]   ;;  %v283_v43 = vshll.u32 %v2153_v34, 16  ;;  %v287_v44 = vshrl.u32 %v2155_v35, 16  ;;  %v1959_v61 = vld [vmem:[%s2445_s2 + $0x70] sm:$0xff]   ;;  %vm2292_vm10 = vmand %vm701_vm6, %vm702_vm7 }
  0x16   : > { %1692 = vmatpush3.bf16.msra.mxu0 %v1935_v8  ;;  %1876 = vmatpush3.bf16.msra.mxu1 %v1934_v7  ;;  %v304_v29 = vrot.slane %v269_v26, 1  ;;  %v268_v30 = vrot.slane %v266_v25, 7  ;;  %v1956_v41 = vld [vmem:[%s2445_s2 + $0x38] sm:$0xff]   ;;  %v290_v45 = vshll.u32 %v2155_v35, 16  ;;  %v282_v52 = vrot.slane %v280_v42, 7  ;;  %v1960_v0 = vld [vmem:[%s2445_s2 + $0x30] sm:$0xff]   ;;  %vm2297_vm11 = vmand %vm724_vm8, %vm725_vm9 }
  0x17   : > { %1693 = vmatprep.subr.bf16.mxu0 %v1936_v9  ;;  %1877 = vmatprep.subr.bf16.mxu1 %v1937_v10  ;;  %v306_v38 = vrot.slane %v276_v33, 1  ;;  %v275_v39 = vrot.slane %v273_v32, 7  ;;  %v308_v50 = vrot.slane %v283_v43, 1  ;;  %v289_v53 = vrot.slane %v287_v44, 7  ;;  %v1957_v55 = vld [vmem:[%s2445_s2 + $0xf8] sm:$0xff]   ;;  %v1961_v2 = vld [vmem:[%s2445_s2 + $0xf0] sm:$0xff]  }
  0x18   : > { %v305_v36 = vor.u32 %v304_v29, %v266_v25  ;;  %v271_v37 = vor.u32 %v269_v26, %v268_v30  ;;  %v310_v51 = vrot.slane %v290_v45, 1  ;;  %v1958_v56 = vld [vmem:[%s2445_s2 + $0xb8] sm:$0xff]   ;;  %v285_v59 = vor.u32 %v283_v43, %v282_v52  ;;  %v1962_v4 = vld [vmem:[%s2445_s2 + $0xb0] sm:$0xff]   ;;  %v1963_v6 = vld [vmem:[%s2445_s2 + $0x68] sm:$0xff]  }
  0x19   : > { %v307_v48 = vor.u32 %v306_v38, %v273_v32  ;;  %v278_v49 = vor.u32 %v276_v33, %v275_v39  ;;  %v309_v57 = vor.u32 %v308_v50, %v280_v42  ;;  %v292_v60 = vor.u32 %v290_v45, %v289_v53  ;;  %v1965_v7 = vld [vmem:[%s2445_s2 + $0xe8] sm:$0xff]   ;;  %v1983_v26 = vld [vmem:[%s2445_s2 + $0x40] sm:$0xff]   ;;  %v1987_v33 = vld [vmem:[%s2446_s3 + $0x78] sm:$0xff]  }
  0x1a   : > { %1694 = vmatpush3.bf16.msra.mxu0 %v1938_v11  ;;  %1878 = vmatpush3.bf16.msra.mxu1 %v1937_v10  ;;  %v319_v46 = vsel %vm2142_vm4, %v305_v36, 0  ;;  %v300_v47 = vsel %vm2147_vm5, 0, %v271_v37  ;;  %v311_v58 = vor.u32 %v310_v51, %v287_v44  ;;  %v302_v3 = vsel %vm2147_vm5, 0, %v285_v59  ;;  %v1964_v8 = vld [vmem:[%s2445_s2 + $0x28] sm:$0xff]   ;;  %v1967_v10 = vld [vmem:[%s2445_s2 + $0x60] sm:$0xff]  }
  0x1b   : > { %1695 = vmatprep.subr.bf16.mxu0 %v1939_v12  ;;  %1879 = vmatprep.subr.bf16.mxu1 %v1940_v13  ;;  %v320_v54 = vsel %vm2142_vm4, %v307_v48, 0  ;;  %v301_v62 = vsel %vm2147_vm5, 0, %v278_v49  ;;  %v321_v63 = vsel %vm2142_vm4, %v309_v57, 0  ;;  %v303_v5 = vsel %vm2147_vm5, 0, %v292_v60  ;;  %v1966_v9 = vld [vmem:[%s2445_s2 + $0xa8] sm:$0xff]   ;;  %v1969_v11 = vld [vmem:[%s2445_s2 + $0xe0] sm:$0xff]  }
  0x1c   : > { %1887 = vmatprep.mubr.bf16.mxu1 %v319_v46  ;;  %v322_v1 = vsel %vm2142_vm4, %v311_v58, 0  ;;  %v1968_v12 = vld [vmem:[%s2445_s2 + $0x20] sm:$0xff]   ;;  %v1982_v25 = vld [vmem:[%s2445_s2 + $0x88] sm:$0xff]  }
  0x1d   : > { %v1985_v29 = vld [vmem:[%s2445_s2 + $0xc0] sm:$0xff]  }
  0x1e   : > { %1696 = vmatpush3.bf16.msra.mxu0 %v1941_v14  ;;  %1880 = vmatpush3.bf16.msra.mxu1 %v1940_v13  ;;  %v1970_v13 = vld [vmem:[%s2445_s2 + $0xa0] sm:$0xff]   ;;  %v1971_v14 = vld [vmem:[%s2445_s2 + $0x58] sm:$0xff]  }
  0x1f   : > { %1697 = vmatprep.subr.bf16.mxu0 %v1942_v15  ;;  %1881 = vmatprep.subr.bf16.mxu1 %v1943_v16  ;;  %v1973_v15 = vld [vmem:[%s2445_s2 + $0xd8] sm:$0xff]   ;;  %v1984_v30 = vld [vmem:[%s2445_s2] sm:$0xff]  }
  0x20   : > { %v1986_v32 = vld [vmem:[%s2445_s2 + $0x80] sm:$0xff]  }
  0x21   : > { %v2283_v39 = vld [vmem:[%s2447_s4] ss:$0 sm:$0xff] }
  0x22   : > { %1698 = vmatpush3.bf16.msra.mxu0 %v1944_v17  ;;  %1882 = vmatpush3.bf16.msra.mxu1 %v1943_v16  ;;  %v1972_v16 = vld [vmem:[%s2445_s2 + $0x18] sm:$0xff]  }
  0x23   : > { %1699 = vmatprep.subr.bf16.mxu0 %v1945_v18  ;;  %1883 = vmatprep.subr.bf16.mxu1 %v1946_v19  ;;  %v1974_v17 = vld [vmem:[%s2445_s2 + $0x98] sm:$0xff]   ;;  %v1975_v18 = vld [vmem:[%s2445_s2 + $0x50] sm:$0xff]  }
  0x26   : > { %1700 = vmatpush3.bf16.msra.mxu0 %v1947_v20  ;;  %1884 = vmatpush3.bf16.msra.mxu1 %v1946_v19  ;;  %v1977_v19 = vld [vmem:[%s2445_s2 + $0xd0] sm:$0xff]  }
  0x27   : > { %1701 = vmatprep.subr.bf16.mxu0 %v1948_v21  ;;  %1885 = vmatprep.subr.bf16.mxu1 %v1949_v22  ;;  %v1976_v20 = vld [vmem:[%s2445_s2 + $0x10] sm:$0xff]  }
  0x28   : > { %v1978_v21 = vld [vmem:[%s2445_s2 + $0x90] sm:$0xff]  }
  0x2a   : > { %1702 = vmatpush3.bf16.msra.mxu0 %v1950_v24  ;;  %1886 = vmatpush3.bf16.msra.mxu1 %v1949_v22  ;;  %v1979_v22 = vld [vmem:[%s2445_s2 + $0x48] sm:$0xff]  }
  0x2b   : > { %1739 = vmatprep.subr.bf16.mxu0 %v1955_v40  ;;  %1779 = vmatprep.subr.bf16.mxu1 %v1957_v55  ;;  %v1980_v24 = vld [vmem:[%s2445_s2 + $0x8] sm:$0xff]  }
  0x2d   : > { %556 = vmatmul.mubr.bf16.vlgmr.msra.gmra.mxu0 %v300_v47  ;;  %1888 = vmatmul.mubr.bf16.vlgmr.msra.gmra.mxu1 %v320_v54 }
  0x2e   : > { %563 = vmatprep.mubr.bf16.mxu0 %v2140_v27  ;;  %1740 = vmatpush3.bf16.msra.mxu0 %v1956_v41 }
  0x2f   : > { %1891 = vmatprep.mubr.bf16.mxu1 %v321_v63  ;;  %1780 = vmatpush3.bf16.msra.mxu1 %v1958_v56 }
  0x30   : > { %1741 = vmatprep.subr.bf16.mxu0 %v1959_v61  ;;  %1781 = vmatprep.subr.bf16.mxu1 %v1961_v2 }
  0x32   : > { %1742 = vmatpush3.bf16.msra.mxu0 %v1960_v0 }
  0x33   : > { %1782 = vmatpush3.bf16.msra.mxu1 %v1962_v4  ;;  %1743 = vmatprep.subr.bf16.mxu0 %v1963_v6 }
  0x34   : > { %1783 = vmatprep.subr.bf16.mxu1 %v1965_v7 }
  0x35   : > { %564 = vmatmul.mubr.bf16.gmra.mxu0 %v301_v62  ;;  %1892 = vmatmul.mubr.bf16.gmra.mxu1 %v322_v1 }
  0x36   : > { %571 = vmatprep.mubr.bf16.mxu0 %v2153_v34  ;;  %1088 = vmatprep.mubr.bf16.mxu1 %v2132_v23  ;;  %v1981_v23 = vld [vmem:[%s2445_s2 + $0xc8] sm:$0xff]  }
  0x37   : > { %1744 = vmatpush3.bf16.msra.mxu0 %v1964_v8  ;;  %1784 = vmatpush3.bf16.msra.mxu1 %v1966_v9  ;;  %v1994_v9 = vld [vmem:[%s2446_s3 + $0x60] sm:$0xff]  }
  0x38   : > { %1745 = vmatprep.subr.bf16.mxu0 %v1967_v10  ;;  %1785 = vmatprep.subr.bf16.mxu1 %v1969_v11 }
  0x3b   : > { %1746 = vmatpush3.bf16.msra.mxu0 %v1968_v12  ;;  %1786 = vmatpush3.bf16.msra.mxu1 %v1970_v13  ;;  %v1996_v13 = vld [vmem:[%s2446_s3 + $0xb0] sm:$0xff]  }
  0x3c   : > { %1747 = vmatprep.subr.bf16.mxu0 %v1971_v14  ;;  %1787 = vmatprep.subr.bf16.mxu1 %v1973_v15 }
  0x3d   : > { %572 = vmatmul.mubr.bf16.gmra.mxu0 %v302_v3 }
  0x3e   : > { %579 = vmatprep.mubr.bf16.mxu0 %v2155_v35 }
  0x3f   : > { %1748 = vmatpush3.bf16.msra.mxu0 %v1972_v16  ;;  %1788 = vmatpush3.bf16.msra.mxu1 %v1974_v17  ;;  %v1988_v16 = vld [vmem:[%s2446_s3 + $0x38] sm:$0xff]  }
  0x40   : > { %1749 = vmatprep.subr.bf16.mxu0 %v1975_v18  ;;  %1789 = vmatprep.subr.bf16.mxu1 %v1977_v19 }
  0x43   : > { %1750 = vmatpush3.bf16.msra.mxu0 %v1976_v20  ;;  %1790 = vmatpush3.bf16.msra.mxu1 %v1978_v21 }
  0x44   : > { %1751 = vmatprep.subr.bf16.mxu0 %v1979_v22  ;;  %1791 = vmatprep.subr.bf16.mxu1 %v1981_v23  ;;  %v1989_v22 = vld [vmem:[%s2446_s3 + $0x70] sm:$0xff]  }
  0x45   : > { %580 = vmatmul.mubr.bf16.gmra.mxu0 %v303_v5 }
  0x47   : > { %1752 = vmatpush3.bf16.msra.mxu0 %v1980_v24  ;;  %1792 = vmatpush3.bf16.msra.mxu1 %v1982_v25 }
  0x48   : > { %1753 = vmatprep.subr.bf16.mxu0 %v1983_v26  ;;  %1793 = vmatprep.subr.bf16.mxu1 %v1985_v29 }
  0x4b   : > { %1754 = vmatpush3.bf16.msra.mxu0 %v1984_v30  ;;  %1794 = vmatpush3.bf16.msra.mxu1 %v1986_v32 }
  0x4c   : > { %1819 = vmatprep.subr.bf16.mxu0 %v1987_v33  ;;  %v1990_v33 = vld [vmem:[%s2446_s3 + $0x30] sm:$0xff]  }
  0xed   : > { %v1703_v36 = vpop.f32.mrf.mxu0  ;;  %v1889_v37 = vpop.f32.mrf.mxu1 }
  0xef   : > { %v1704_v38 = vpop.f32.mrf.mxu0  ;;  %v622_v40 = vpop.f32.mrf.mxu1 }
  0xf0   : > { %v1705_v41 = vadd.f32 %v1704_v38, %v1703_v36 }
  0xf1   : > { %v1706_v42 = vpop.f32.mrf.mxu0  ;;  %v1890_v44 = vpop.f32.mrf.mxu1 }
  0xf2   : > { %v558_v43 = vadd.f32 %v1705_v41, %v2283_v39  ;;  %v1991_v41 = vld [vmem:[%s2446_s3 + $0x68] sm:$0xff]  }
  0xf3   : > { %v1707_v45 = vpop.f32.mrf.mxu0  ;;  %v625_v50 = vpop.f32.mrf.mxu1 }
  0xf4   : > { %v1708_v46 = vadd.f32 %v1707_v45, %v1706_v42  ;;  %v623_v48 = vadd.f32 %v622_v40, %v558_v43 }
  0xf5   : > { %v1709_v47 = vpop.f32.mrf.mxu0  ;;  %v2288_v59 = vpop.f32.mrf.mxu1 }
  0xf6   : > { %v561_v49 = vadd.f32 %v1708_v46, %v2283_v39  ;;  %v653_v55 = vmax.f32 %v623_v48, 0.0 }
  0xf7   : > { %v1710_v51 = vpop.f32.mrf.mxu0  ;;  %v638_v3 = vpop.f32.mrf.mxu1 }
  0xf8   : > { %v626_v52 = vadd.f32 %v625_v50, %v561_v49  ;;  %v1711_v53 = vadd.f32 %v1710_v51, %v1709_v47 }
  0xf9   : > { %v1712_v54 = vpop.f32.mrf.mxu0  ;;  %v1894_v20 = vpop.f32.mrf.mxu1 }
  0xfa   : > { %v654_v56 = vmax.f32 %v626_v52, 0.0  ;;  %v566_v57 = vadd.f32 %v1711_v53, %v2283_v39 }
  0xfb   : > { %v1713_v58 = vpop.f32.mrf.mxu0  ;;  %v641_v36 = vpop.f32.mrf.mxu1 }
  0xfc   : > { %v661_v60 = vpack.c.bf16 %v654_v56, %v653_v55  ;;  %v1714_v61 = vadd.f32 %v1713_v58, %v1712_v54  ;;  %v631_v2 = vadd.f32 %v1889_v37, %v566_v57 }
  0xfd   : > { %v1715_v62 = vpop.f32.mrf.mxu0 }
  0xfe   : > { %v666_v63 = vshrl.u32 %v661_v60, 16  ;;  %v669_v0 = vshll.u32 %v661_v60, 16  ;;  %v569_v1 = vadd.f32 %v1714_v61, %v2283_v39  ;;  %1023 = vmatprep.mubr.bf16.mxu0 %v661_v60  ;;  %v655_v17 = vmax.f32 %v631_v2, 0.0 }
  0xff   : > { %v1716_v4 = vpop.f32.mrf.mxu0 }
 0x100   : > { %v668_v5 = vrot.slane %v666_v63, 6  ;;  %v671_v6 = vrot.slane %v669_v0, 7  ;;  %v708_v7 = vrot.slane %v666_v63, 1  ;;  %v709_v8 = vrot.slane %v669_v0, 2 }
 0x101   : > { %v634_v10 = vadd.f32 %v1890_v44, %v569_v1  ;;  %v1717_v11 = vadd.f32 %v1716_v4, %v1715_v62  ;;  %v1718_v12 = vpop.f32.mrf.mxu0 }
 0x102   : > { %v672_v14 = vor.u32 %v671_v6, %v668_v5  ;;  %v710_v15 = vor.u32 %v709_v8, %v708_v7 }
 0x103   : > { %v656_v18 = vmax.f32 %v634_v10, 0.0  ;;  %v574_v19 = vadd.f32 %v1717_v11, %v2283_v39  ;;  %v1719_v21 = vpop.f32.mrf.mxu0 }
 0x104   : > { %v1720_v23 = vadd.f32 %v1719_v21, %v1718_v12  ;;  %v704_v24 = vsel %vm2292_vm10, 0, %v672_v14  ;;  %v727_v25 = vsel %vm2297_vm11, %v710_v15, 0  ;;  %v1995_v21 = vld [vmem:[%s2446_s3 + $0x20] sm:$0xff]  }
 0x105   : > { %v1721_v26 = vpop.f32.mrf.mxu0  ;;  %1024 = vmatmul.mubr.bf16.vlgmr.msra.gmra.mxu0 %v704_v24  ;;  %1089 = vmatmul.mubr.bf16.vlgmr.msra.gmra.mxu1 %v727_v25  ;;  %v662_v29 = vpack.c.bf16 %v656_v18, %v655_v17  ;;  %v639_v30 = vadd.f32 %v638_v3, %v574_v19  ;;  %v1998_v24 = vld [vmem:[%s2446_s3 + $0x18] sm:$0xff]   ;;  %v2000_v25 = vld [vmem:[%s2446_s3 + $0x50] sm:$0xff]  }
 0x106   : > { %v577_v32 = vadd.f32 %v1720_v23, %v2283_v39  ;;  %1096 = vmatprep.mubr.bf16.mxu1 %v2140_v27  ;;  %1820 = vmatpush3.bf16.msra.mxu0 %v1988_v16  ;;  %v1999_v23 = vld [vmem:[%s2446_s3 + $0xa8] sm:$0xff]  }
 0x107   : > { %1031 = vmatprep.mubr.bf16.mxu0 %v662_v29  ;;  %v1722_v37 = vpop.f32.mrf.mxu0  ;;  %v674_v38 = vshrl.u32 %v662_v29, 16  ;;  %v677_v40 = vshll.u32 %v662_v29, 16  ;;  %1821 = vmatprep.subr.bf16.mxu0 %v1989_v22  ;;  %v657_v48 = vmax.f32 %v639_v30, 0.0  ;;  %v1997_v22 = vld [vmem:[%s2446_s3 + $0x58] sm:$0xff]   ;;  %v2001_v29 = vld [vmem:[%s2446_s3 + $0x10] sm:$0xff]   ;;  %v2003_v30 = vld [vmem:[%s2446_s3 + $0x48] sm:$0xff]  }
 0x108   : > { %v642_v42 = vadd.f32 %v641_v36, %v577_v32  ;;  %v1723_v43 = vadd.f32 %v1722_v37, %v1721_v26  ;;  %v2002_v26 = vld [vmem:[%s2446_s3 + $0xa0] sm:$0xff]   ;;  %v2005_v32 = vld [vmem:[%s2446_s3 + $0x98] sm:$0xff]   ;;  %v2008_v37 = vld [vmem:[%s2446_s3 + $0x90] sm:$0xff]  }
 0x109   : > { %v1724_v44 = vpop.f32.mrf.mxu0  ;;  %v676_v45 = vrot.slane %v674_v38, 6  ;;  %v679_v27 = vrot.slane %v677_v40, 7  ;;  %v711_v46 = vrot.slane %v674_v38, 1  ;;  %v712_v47 = vrot.slane %v677_v40, 2  ;;  %v2006_v36 = vld [vmem:[%s2446_s3 + $0x40] sm:$0xff]   ;;  %v2009_v40 = vld [vmem:[%s2446_s3 + $0x88] sm:$0xff]  }
 0x10a   : > { %v658_v49 = vmax.f32 %v642_v42, 0.0  ;;  %v582_v50 = vadd.f32 %v1723_v43, %v2283_v39  ;;  %1822 = vmatpush3.bf16.msra.mxu0 %v1990_v33  ;;  %v2004_v33 = vld [vmem:[%s2446_s3 + $0x8] sm:$0xff]   ;;  %v2007_v38 = vld [vmem:[%s2446_s3] sm:$0xff]  }
 0x10b   : > { %v1725_v51 = vpop.f32.mrf.mxu0  ;;  %v680_v52 = vor.u32 %v679_v27, %v676_v45  ;;  %v713_v53 = vor.u32 %v712_v47, %v711_v46  ;;  %1823 = vmatprep.subr.bf16.mxu0 %v1991_v41  ;;  %v2010_v41 = vld [vmem:[%s2446_s3 + $0x80] sm:$0xff]  }
 0x10c   : > { %v1726_v54 = vadd.f32 %v1725_v51, %v1724_v44  ;;  %v663_v55 = vpack.c.bf16 %v658_v49, %v657_v48  ;;  %v647_v58 = vadd.f32 %v2288_v59, %v582_v50  ;;  %v2397_v44 = vld [vmem:[%s2447_s4 + $0x1] ss:$0 sm:$0xff] }
 0x10d   : > { %v705_v56 = vsel %vm2292_vm10, 0, %v680_v52  ;;  %v728_v57 = vsel %vm2297_vm11, %v713_v53, 0 }
 0x10e   : > { %v585_v60 = vadd.f32 %v1726_v54, %v2283_v39  ;;  %1032 = vmatmul.mubr.bf16.gmra.mxu0 %v705_v56  ;;  %1097 = vmatmul.mubr.bf16.gmra.mxu1 %v728_v57  ;;  %v682_v61 = vshrl.u32 %v663_v55, 16  ;;  %v685_v62 = vshll.u32 %v663_v55, 16  ;;  %v659_v4 = vmax.f32 %v647_v58, 0.0 }
 0x10f   : > { %1039 = vmatprep.mubr.bf16.mxu0 %v663_v55  ;;  %1104 = vmatprep.mubr.bf16.mxu1 %v2153_v34 }
 0x110   : > { %v650_v63 = vadd.f32 %v1894_v20, %v585_v60  ;;  %v684_v0 = vrot.slane %v682_v61, 6  ;;  %v687_v1 = vrot.slane %v685_v62, 7  ;;  %v714_v2 = vrot.slane %v682_v61, 1  ;;  %v1993_v20 = vld [vmem:[%s2446_s3 + $0xb8] sm:$0xff]  }
 0x111   : > { %v715_v3 = vrot.slane %v685_v62, 2  ;;  %1895 = vmatprep.subr.bf16.mxu1 %v1993_v20 }
 0x112   : > { %v660_v5 = vmax.f32 %v650_v63, 0.0  ;;  %v688_v6 = vor.u32 %v687_v1, %v684_v0  ;;  %1896 = vmatpush3.bf16.msra.mxu1 %v1993_v20 }
 0x113   : > { %v716_v7 = vor.u32 %v715_v3, %v714_v2  ;;  %1897 = vmatprep.subr.bf16.mxu1 %v1996_v13 }
 0x114   : > { %v706_v59 = vsel %vm2292_vm10, 0, %v688_v6  ;;  %v664_v39 = vpack.c.bf16 %v660_v5, %v659_v4 }
 0x115   : > { %v729_v8 = vsel %vm2297_vm11, %v716_v7, 0 }
 0x116   : > { %1040 = vmatmul.mubr.bf16.gmra.mxu0 %v706_v59  ;;  %1105 = vmatmul.mubr.bf16.gmra.mxu1 %v729_v8  ;;  %v690_v10 = vshrl.u32 %v664_v39, 16  ;;  %v693_v34 = vshll.u32 %v664_v39, 16 }
 0x117   : > { %1047 = vmatprep.mubr.bf16.mxu0 %v664_v39  ;;  %1112 = vmatprep.mubr.bf16.mxu1 %v2155_v35  ;;  %v1992_v35 = vld [vmem:[%s2446_s3 + $0x28] sm:$0xff]  }
 0x118   : > { %v692_v11 = vrot.slane %v690_v10, 6  ;;  %v695_v12 = vrot.slane %v693_v34, 7  ;;  %v717_v14 = vrot.slane %v690_v10, 1  ;;  %v718_v15 = vrot.slane %v693_v34, 2  ;;  %1824 = vmatpush3.bf16.msra.mxu0 %v1992_v35  ;;  %1898 = vmatpush3.bf16.msra.mxu1 %v1996_v13 }
 0x119   : > { %1825 = vmatprep.subr.bf16.mxu0 %v1994_v9  ;;  %1899 = vmatprep.subr.bf16.mxu1 %v1999_v23 }
 0x11a   : > { %v696_v16 = vor.u32 %v695_v12, %v692_v11  ;;  %v719_v17 = vor.u32 %v718_v15, %v717_v14 }
 0x11c   : > { %v707_v18 = vsel %vm2292_vm10, 0, %v696_v16  ;;  %v730_v19 = vsel %vm2297_vm11, %v719_v17, 0  ;;  %1826 = vmatpush3.bf16.msra.mxu0 %v1995_v21  ;;  %1900 = vmatpush3.bf16.msra.mxu1 %v1999_v23 }
 0x11d   : > { %1827 = vmatprep.subr.bf16.mxu0 %v1997_v22  ;;  %1901 = vmatprep.subr.bf16.mxu1 %v2002_v26 }
 0x11e   : > { %1048 = vmatmul.mubr.bf16.gmra.mxu0 %v707_v18  ;;  %1113 = vmatmul.mubr.bf16.gmra.mxu1 %v730_v19 }
 0x120   : > { %1828 = vmatpush3.bf16.msra.mxu0 %v1998_v24  ;;  %1902 = vmatpush3.bf16.msra.mxu1 %v2002_v26 }
 0x121   : > { %1829 = vmatprep.subr.bf16.mxu0 %v2000_v25  ;;  %1903 = vmatprep.subr.bf16.mxu1 %v2005_v32 }
 0x124   : > { %1830 = vmatpush3.bf16.msra.mxu0 %v2001_v29  ;;  %1904 = vmatpush3.bf16.msra.mxu1 %v2005_v32 }
 0x125   : > { %1831 = vmatprep.subr.bf16.mxu0 %v2003_v30  ;;  %1905 = vmatprep.subr.bf16.mxu1 %v2008_v37 }
 0x128   : > { %1832 = vmatpush3.bf16.msra.mxu0 %v2004_v33  ;;  %1906 = vmatpush3.bf16.msra.mxu1 %v2008_v37 }
 0x129   : > { %1833 = vmatprep.subr.bf16.mxu0 %v2006_v36  ;;  %1907 = vmatprep.subr.bf16.mxu1 %v2009_v40 }
 0x12c   : > { %1834 = vmatpush3.bf16.msra.mxu0 %v2007_v38  ;;  %1908 = vmatpush3.bf16.msra.mxu1 %v2009_v40 }
 0x12d   : > { %1909 = vmatprep.subr.bf16.mxu1 %v2010_v41 }
 0x130   : > { %1910 = vmatpush3.bf16.msra.mxu1 %v2010_v41 }
 0x1c5   : > { %v1755_v42 = vpop.f32.mrf.mxu0  ;;  %v1795_v43 = vpop.f32.mrf.mxu1 }
 0x1c7   : > { %v1756_v45 = vpop.f32.mrf.mxu0  ;;  %v1796_v27 = vpop.f32.mrf.mxu1 }
 0x1c8   : > { %v1757_v46 = vadd.f32 %v1756_v45, %v1755_v42  ;;  %v1797_v52 = vadd.f32 %v1796_v27, %v1795_v43 }
 0x1c9   : > { %v1758_v47 = vpop.f32.mrf.mxu0  ;;  %v1798_v48 = vpop.f32.mrf.mxu1 }
 0x1ca   : > { %v1026_v49 = vadd.f32 %v1757_v46, %v2397_v44 }
 0x1cb   : > { %v1759_v50 = vpop.f32.mrf.mxu0  ;;  %v1799_v51 = vpop.f32.mrf.mxu1 }
 0x1cc   : > { %v1760_v53 = vadd.f32 %v1759_v50, %v1758_v47  ;;  %v1091_v54 = vadd.f32 %v1797_v52, %v1026_v49  ;;  %v1800_v56 = vadd.f32 %v1799_v51, %v1798_v48 }
 0x1ce   : > { %v1029_v55 = vadd.f32 %v1760_v53, %v2397_v44  ;;  %v1761_v57 = vpop.f32.mrf.mxu0  ;;  %v1801_v58 = vpop.f32.mrf.mxu1  ;;  %v1121_v0 = vmax.f32 %v1091_v54, 0.0 }
 0x1d0   : > { %v1094_v60 = vadd.f32 %v1800_v56, %v1029_v55  ;;  %v1762_v61 = vpop.f32.mrf.mxu0  ;;  %v1802_v62 = vpop.f32.mrf.mxu1 }
 0x1d1   : > { %v1763_v63 = vadd.f32 %v1762_v61, %v1761_v57  ;;  %v1803_v39 = vadd.f32 %v1802_v62, %v1801_v58 }
 0x1d2   : > { %v1122_v1 = vmax.f32 %v1094_v60, 0.0  ;;  %v1764_v2 = vpop.f32.mrf.mxu0  ;;  %v1804_v3 = vpop.f32.mrf.mxu1 }
 0x1d3   : > { %v1034_v4 = vadd.f32 %v1763_v63, %v2397_v44 }
 0x1d4   : > { %v1765_v5 = vpop.f32.mrf.mxu0  ;;  %v1805_v6 = vpop.f32.mrf.mxu1  ;;  %v1129_v7 = vpack.c.bf16 %v1122_v1, %v1121_v0 }
 0x1d5   : > { %v1766_v59 = vadd.f32 %v1765_v5, %v1764_v2  ;;  %v1806_v14 = vadd.f32 %v1805_v6, %v1804_v3  ;;  %v1099_v15 = vadd.f32 %v1803_v39, %v1034_v4 }
 0x1d6   : > { %v1767_v8 = vpop.f32.mrf.mxu0  ;;  %v1807_v10 = vpop.f32.mrf.mxu1  ;;  %v1134_v34 = vshrl.u32 %v1129_v7, 16  ;;  %v1137_v11 = vshll.u32 %v1129_v7, 16  ;;  %1413 = vmatprep.mubr.bf16.mxu0 %v1129_v7 }
 0x1d7   : > { %v1037_v12 = vadd.f32 %v1766_v59, %v2397_v44  ;;  %v1123_v25 = vmax.f32 %v1099_v15, 0.0 }
 0x1d8   : > { %v1768_v16 = vpop.f32.mrf.mxu0  ;;  %v1808_v17 = vpop.f32.mrf.mxu1  ;;  %v1136_v18 = vrot.slane %v1134_v34, 7  ;;  %v1169_v19 = vrot.slane %v1137_v11, 1 }
 0x1d9   : > { %v1102_v20 = vadd.f32 %v1806_v14, %v1037_v12  ;;  %v1769_v35 = vadd.f32 %v1768_v16, %v1767_v8  ;;  %v1809_v33 = vadd.f32 %v1808_v17, %v1807_v10 }
 0x1da   : > { %v1770_v9 = vpop.f32.mrf.mxu0  ;;  %v1810_v13 = vpop.f32.mrf.mxu1  ;;  %v1139_v21 = vor.u32 %v1137_v11, %v1136_v18  ;;  %v1170_v22 = vor.u32 %v1169_v19, %v1134_v34 }
 0x1db   : > { %v1124_v23 = vmax.f32 %v1102_v20, 0.0  ;;  %v1042_v24 = vadd.f32 %v1769_v35, %v2397_v44 }
 0x1dc   : > { %v1771_v26 = vpop.f32.mrf.mxu0  ;;  %v1811_v29 = vpop.f32.mrf.mxu1  ;;  %v1165_v30 = vsel %vm2147_vm5, 0, %v1139_v21  ;;  %v1181_v32 = vsel %vm2142_vm4, %v1170_v22, 0 }
 0x1dd   : > { %v1772_v36 = vadd.f32 %v1771_v26, %v1770_v9  ;;  %1414 = vmatmul.mubr.bf16.vlgmr.msra.gmra.mxu0 %v1165_v30  ;;  %1911 = vmatprep.mubr.bf16.mxu1 %v1181_v32  ;;  %v1130_v40 = vpack.c.bf16 %v1124_v23, %v1123_v25  ;;  %v1107_v41 = vadd.f32 %v1809_v33, %v1042_v24  ;;  %v1658_v26 = vld [vmem:[%s2447_s4 + $0x2] ss:$0 sm:$0xff] }
 0x1de   : > { %v1773_v37 = vpop.f32.mrf.mxu0  ;;  %v1813_v38 = vpop.f32.mrf.mxu1  ;;  %v1812_v43 = vadd.f32 %v1811_v29, %v1810_v13 }
 0x1df   : > { %v1045_v42 = vadd.f32 %v1772_v36, %v2397_v44  ;;  %1421 = vmatprep.mubr.bf16.mxu0 %v1130_v40  ;;  %v1141_v46 = vshrl.u32 %v1130_v40, 16  ;;  %v1144_v47 = vshll.u32 %v1130_v40, 16  ;;  %v1125_v54 = vmax.f32 %v1107_v41, 0.0 }
 0x1e0   : > { %v1774_v45 = vpop.f32.mrf.mxu0  ;;  %v1814_v27 = vpop.f32.mrf.mxu1 }
 0x1e1   : > { %v1110_v48 = vadd.f32 %v1812_v43, %v1045_v42  ;;  %v1775_v49 = vadd.f32 %v1774_v45, %v1773_v37  ;;  %v1143_v52 = vrot.slane %v1141_v46, 7  ;;  %v1171_v53 = vrot.slane %v1144_v47, 1 }
 0x1e2   : > { %v1776_v50 = vpop.f32.mrf.mxu0  ;;  %v1816_v51 = vpop.f32.mrf.mxu1  ;;  %v1815_v57 = vadd.f32 %v1814_v27, %v1813_v38 }
 0x1e3   : > { %v1126_v55 = vmax.f32 %v1110_v48, 0.0  ;;  %v1050_v56 = vadd.f32 %v1775_v49, %v2397_v44  ;;  %v1146_v61 = vor.u32 %v1144_v47, %v1143_v52  ;;  %v1172_v62 = vor.u32 %v1171_v53, %v1141_v46 }
 0x1e4   : > { %v1777_v58 = vpop.f32.mrf.mxu0  ;;  %v1817_v60 = vpop.f32.mrf.mxu1 }
 0x1e5   : > { %v1778_v63 = vadd.f32 %v1777_v58, %v1776_v50  ;;  %v1131_v0 = vpack.c.bf16 %v1126_v55, %v1125_v54  ;;  %v1115_v1 = vadd.f32 %v1815_v57, %v1050_v56  ;;  %v1166_v2 = vsel %vm2147_vm5, 0, %v1146_v61 }
 0x1e6   : > { %v1182_v3 = vsel %vm2142_vm4, %v1172_v62, 0  ;;  %v1818_v5 = vadd.f32 %v1817_v60, %v1816_v51  ;;  %1422 = vmatmul.mubr.bf16.gmra.mxu0 %v1166_v2 }
 0x1e7   : > { %v1053_v4 = vadd.f32 %v1778_v63, %v2397_v44  ;;  %1912 = vmatmul.mubr.bf16.vlgmr.msra.gmra.mxu1 %v1182_v3  ;;  %v1148_v6 = vshrl.u32 %v1131_v0, 16  ;;  %v1151_v7 = vshll.u32 %v1131_v0, 16  ;;  %1429 = vmatprep.mubr.bf16.mxu0 %v1131_v0  ;;  %v1127_v10 = vmax.f32 %v1115_v1, 0.0 }
 0x1e9   : > { %v1118_v59 = vadd.f32 %v1818_v5, %v1053_v4  ;;  %v1150_v39 = vrot.slane %v1148_v6, 7  ;;  %v1173_v8 = vrot.slane %v1151_v7, 1 }
 0x1eb   : > { %v1128_v34 = vmax.f32 %v1118_v59, 0.0  ;;  %v1153_v11 = vor.u32 %v1151_v7, %v1150_v39  ;;  %v1174_v12 = vor.u32 %v1173_v8, %v1148_v6 }
 0x1ed   : > { %v1167_v14 = vsel %vm2147_vm5, 0, %v1153_v11  ;;  %v1183_v15 = vsel %vm2142_vm4, %v1174_v12, 0  ;;  %v1132_v44 = vpack.c.bf16 %v1128_v34, %v1127_v10 }
 0x1ee   : > { %1915 = vmatprep.mubr.bf16.mxu1 %v1183_v15  ;;  %1430 = vmatmul.mubr.bf16.gmra.mxu0 %v1167_v14 }
 0x1ef   : > { %v1155_v16 = vshrl.u32 %v1132_v44, 16  ;;  %v1158_v17 = vshll.u32 %v1132_v44, 16  ;;  %1437 = vmatprep.mubr.bf16.mxu0 %v1132_v44 }
 0x1f1   : > { %v1157_v18 = vrot.slane %v1155_v16, 7  ;;  %v1175_v19 = vrot.slane %v1158_v17, 1 }
 0x1f3   : > { %v1160_v20 = vor.u32 %v1158_v17, %v1157_v18  ;;  %v1176_v35 = vor.u32 %v1175_v19, %v1155_v16 }
 0x1f5   : > { %v1168_v9 = vsel %vm2147_vm5, 0, %v1160_v20  ;;  %v1184_v13 = vsel %vm2142_vm4, %v1176_v35, 0 }
 0x1f6   : > { %1916 = vmatmul.mubr.bf16.gmra.mxu1 %v1184_v13  ;;  %1438 = vmatmul.mubr.bf16.gmra.mxu0 %v1168_v9 }
 0x29d   : > { %v1835_v21 = vpop.f32.mrf.mxu0 }
 0x29f   : > { %v1836_v22 = vpop.f32.mrf.mxu0 }
 0x2a0   : > { %v1837_v25 = vadd.f32 %v1836_v22, %v1835_v21 }
 0x2a1   : > { %v1838_v23 = vpop.f32.mrf.mxu0 }
 0x2a2   : > { %v1416_v31 = vadd.f32 %v1837_v25, %v1658_v26 }
 0x2a3   : > { %v1839_v24 = vpop.f32.mrf.mxu0 }
 0x2a4   : > { %v1840_v32 = vadd.f32 %v1839_v24, %v1838_v23 }
 0x2a6   : > { %v1841_v29 = vpop.f32.mrf.mxu0  ;;  %v1419_v43 = vadd.f32 %v1840_v32, %v1658_v26 }
 0x2a7   : > { %v1913_v30 = vpop.f32.mrf.mxu1 }
 0x2a8   : > { %v1842_v33 = vpop.f32.mrf.mxu0 }
 0x2a9   : > { %v1480_v36 = vpop.f32.mrf.mxu1  ;;  %v1843_v28 = vadd.f32 %v1842_v33, %v1841_v29 }
 0x2aa   : > { %v1481_v37 = vadd.f32 %v1480_v36, %v1416_v31  ;;  %v1844_v38 = vpop.f32.mrf.mxu0 }
 0x2ab   : > { %v1914_v40 = vpop.f32.mrf.mxu1  ;;  %v1424_v41 = vadd.f32 %v1843_v28, %v1658_v26 }
 0x2ac   : > { %v1511_v42 = vmax.f32 %v1481_v37, 0.0  ;;  %v1845_v45 = vpop.f32.mrf.mxu0 }
 0x2ad   : > { %v1483_v27 = vpop.f32.mrf.mxu1  ;;  %v1489_v46 = vadd.f32 %v1913_v30, %v1424_v41  ;;  %v1846_v47 = vadd.f32 %v1845_v45, %v1844_v38 }
 0x2ae   : > { %1519 = vst [vmem:[%s2430_s7] sm:$0xff] %v1511_v42  ;;  %v1484_v48 = vadd.f32 %v1483_v27, %v1419_v43  ;;  %v1847_v49 = vpop.f32.mrf.mxu0 }
 0x2af   : > { %v1513_v50 = vmax.f32 %v1489_v46, 0.0  ;;  %v1427_v51 = vadd.f32 %v1846_v47, %v1658_v26 }
 0x2b0   : > { %v1512_v52 = vmax.f32 %v1484_v48, 0.0  ;;  %v1848_v53 = vpop.f32.mrf.mxu0 }
 0x2b1   : > { %1521 = vst [vmem:[%s2430_s7 + $0x10] sm:$0xff] %v1513_v50  ;;  %v1492_v54 = vadd.f32 %v1914_v40, %v1427_v51  ;;  %v1849_v55 = vadd.f32 %v1848_v53, %v1847_v49 }
 0x2b2   : > { %1520 = vst [vmem:[%s2430_s7 + $0x8] sm:$0xff] %v1512_v52  ;;  %v1850_v56 = vpop.f32.mrf.mxu0 }
 0x2b3   : > { %v1514_v57 = vmax.f32 %v1492_v54, 0.0  ;;  %v1432_v63 = vadd.f32 %v1849_v55, %v1658_v26 }
 0x2b4   : > { %v1851_v58 = vpop.f32.mrf.mxu0 }
 0x2b5   : > { %1522 = vst [vmem:[%s2430_s7 + $0x18] sm:$0xff] %v1514_v57  ;;  %v1852_v61 = vadd.f32 %v1851_v58, %v1850_v56 }
 0x2b6   : > { %v1917_v60 = vpop.f32.mrf.mxu1  ;;  %v1853_v62 = vpop.f32.mrf.mxu0 }
 0x2b7   : > { %v1435_v7 = vadd.f32 %v1852_v61, %v1658_v26 }
 0x2b8   : > { %v1496_v0 = vpop.f32.mrf.mxu1  ;;  %v1854_v1 = vpop.f32.mrf.mxu0 }
 0x2b9   : > { %v1497_v2 = vadd.f32 %v1496_v0, %v1432_v63  ;;  %v1855_v3 = vadd.f32 %v1854_v1, %v1853_v62 }
 0x2ba   : > { %v1918_v4 = vpop.f32.mrf.mxu1  ;;  %v1856_v6 = vpop.f32.mrf.mxu0 }
 0x2bb   : > { %v1515_v5 = vmax.f32 %v1497_v2, 0.0  ;;  %v1440_v59 = vadd.f32 %v1855_v3, %v1658_v26 }
 0x2bc   : > { %v1499_v39 = vpop.f32.mrf.mxu1  ;;  %v1857_v8 = vpop.f32.mrf.mxu0 }
 0x2bd   : > { %1523 = vst [vmem:[%s2430_s7 + $0x20] sm:$0xff] %v1515_v5  ;;  %v1500_v10 = vadd.f32 %v1499_v39, %v1435_v7  ;;  %v1505_v34 = vadd.f32 %v1917_v60, %v1440_v59  ;;  %v1858_v11 = vadd.f32 %v1857_v8, %v1856_v6 }
 0x2bf   : > { %v1516_v12 = vmax.f32 %v1500_v10, 0.0  ;;  %v1517_v14 = vmax.f32 %v1505_v34, 0.0  ;;  %v1443_v15 = vadd.f32 %v1858_v11, %v1658_v26 }
 0x2c1   : > { %1524 = vst [vmem:[%s2430_s7 + $0x28] sm:$0xff] %v1516_v12  ;;  %1525 = vst [vmem:[%s2430_s7 + $0x30] sm:$0xff] %v1517_v14  ;;  %v1508_v44 = vadd.f32 %v1918_v4, %v1443_v15 }
 0x2c3   : > { %v1518_v16 = vmax.f32 %v1508_v44, 0.0 }
 0x2c5   : > { %1526 = vst [vmem:[%s2430_s7 + $0x38] sm:$0xff] %v1518_v16 }
 0x2c6 PF: > { %s15_s18 = sadd.s32 1, %s2017_s18  }
 0x2c7   : > { %p12_p4 = scmp.ge.s32.totalorder %s15_s18, 4  }
 0x2c9   :  { %14 = sbr.rel (!%p12_p4) target bundleno = 1 (0x1), region = 70 }

</bundles_post_ra>
